<compile_context>
chip_gen: v5e
topology: v5e:2x2
jax: 0.10.0
libtpu: 0.0.40
codegen_flags: <defaults>
</compile_context>

<pallas_src>
import functools
import math

import jax
import jax.numpy as jnp
from jax import lax
from jax.experimental import pallas as pl
from jax.experimental.pallas import tpu as pltpu

_HIGHEST = lax.Precision.HIGHEST


def _transformer_layer_kernel(x_ref, wqkv_ref, bqkv_ref, wo_ref, bo_ref,
                              w1_ref, w2_ref, o_ref, ctx_ref,
                              *, num_heads, block_b, matmul_dtype, precision):
    S = x_ref.shape[0]
    C = x_ref.shape[2]
    H = num_heads
    Dh = C // H

    def mm(a, b):
        if matmul_dtype is not None:
            a = a.astype(matmul_dtype)
            b = b.astype(matmul_dtype)
        return jnp.dot(a, b, precision=precision,
                       preferred_element_type=jnp.float32)

    def mm_nt(a, b):  # a @ b.T with no materialized transpose
        if matmul_dtype is not None:
            a = a.astype(matmul_dtype)
            b = b.astype(matmul_dtype)
        return lax.dot_general(a, b, (((1,), (1,)), ((), ())),
                               precision=precision,
                               preferred_element_type=jnp.float32)

    wqkv = wqkv_ref[...]
    bqkv = bqkv_ref[...]
    wo = wo_ref[...]
    bo = bo_ref[...]
    w1 = w1_ref[...]
    w2 = w2_ref[...]

    for b in range(block_b):
        # (S, 1, C) static slice of the batch dim -> (S, C), residual kept f32.
        xb = jnp.squeeze(x_ref[:, b:b + 1, :], axis=1).astype(jnp.float32)

        # Fused q|k|v projection: one (S, C) @ (C, 3C) matmul (+ packed bias,
        # with the 1/sqrt(Dh) query scale already folded into W/b).
        qkv = mm(xb, wqkv) + bqkv                      # (S, 3C) f32

        # Per-head attention; each head's context is stored straight into the
        # (S, C) VMEM scratch slab at its static lane offset.
        for h in range(H):
            lo = h * Dh
            qh = qkv[:, lo:lo + Dh]
            kh = qkv[:, C + lo:C + lo + Dh]
            vh = qkv[:, 2 * C + lo:2 * C + lo + Dh]
            s = mm_nt(qh, kh)                          # (S, S) f32
            m = jnp.max(s, axis=-1, keepdims=True)
            e = jnp.exp(s - m)
            denom = jnp.sum(e, axis=-1, keepdims=True)
            p = e * pl.reciprocal(denom, approx=True)  # EUP reciprocal
            ctx_ref[:, lo:lo + Dh] = mm(p, vh)

        ctx = ctx_ref[...]                             # (S, C) f32
        y = mm(ctx, wo) + bo + xb                      # out_proj + residual
        z = mm(mm(y, w1), w2) + y                      # fc2(fc1(y)) + residual

        o_ref[:, b:b + 1, :] = z[:, None, :].astype(o_ref.dtype)


def _choose_block_b(B, S, row_budget=1024):
    # The block's second-to-last dim (batch) must be a multiple of the
    # 8-sublane tile or equal to the full batch dim.
    divs = [d for d in range(1, B + 1) if B % d == 0 and (d % 8 == 0 or d == B)]
    fitting = [d for d in divs if d * S <= row_budget]
    return max(fitting) if fitting else min(divs)


def transformer_layer(x, params, num_heads, *, matmul_dtype=jnp.bfloat16,
                      block_b=None):
    """Pallas TransformerLayer.forward. x: (S, B, C), PyTorch seq-first layout."""
    S, B, C = x.shape
    H = num_heads
    assert C % H == 0
    Dh = C // H
    scale = 1.0 / math.sqrt(Dh)
    f32 = jnp.float32

    # --- one-time weight fusion / layout plumbing (exact in real arithmetic) ---
    wi = params["in_proj_weight"].astype(f32)
    bi = params["in_proj_bias"].astype(f32)
    # q = (x @ Wq.T) @ Win_q.T + b_q  ==  x @ (Wq.T @ Win_q.T) + b_q
    wq_eff = (params["wq"].astype(f32).T @ wi[:C].T) * scale
    wk_eff = params["wk"].astype(f32).T @ wi[C:2 * C].T
    wv_eff = params["wv"].astype(f32).T @ wi[2 * C:].T
    wqkv = jnp.concatenate([wq_eff, wk_eff, wv_eff], axis=1)        # (C, 3C)
    bqkv = jnp.concatenate([bi[:C] * scale, bi[C:2 * C], bi[2 * C:]]
                           ).reshape(1, 3 * C)
    wo_t = params["wo"].astype(f32).T
    bo = params["bo"].astype(f32).reshape(1, C)
    w1_t = params["w1"].astype(f32).T
    w2_t = params["w2"].astype(f32).T

    wdt = matmul_dtype if matmul_dtype is not None else f32
    wqkv = wqkv.astype(wdt)
    wo_t = wo_t.astype(wdt)
    w1_t = w1_t.astype(wdt)
    w2_t = w2_t.astype(wdt)

    if block_b is None:
        block_b = _choose_block_b(B, S)
    assert B % block_b == 0

    full_precision = (matmul_dtype is None
                      or jnp.dtype(matmul_dtype) == jnp.dtype(jnp.float32))
    precision = _HIGHEST if full_precision else None

    itemsize = jnp.dtype(x.dtype).itemsize
    w_bytes = sum(int(w.size) * jnp.dtype(w.dtype).itemsize
                  for w in (wqkv, bqkv, wo_t, bo, w1_t, w2_t))
    cost = pl.CostEstimate(
        flops=int(2 * B * S * C * (6 * C + 2 * S)),
        transcendentals=int(B * H * S * S),
        bytes_accessed=int(2 * B * S * C * itemsize + w_bytes))

    kernel = functools.partial(
        _transformer_layer_kernel, num_heads=H, block_b=block_b,
        matmul_dtype=matmul_dtype, precision=precision)

    out = pl.pallas_call(
        kernel,
        out_shape=jax.ShapeDtypeStruct((S, B, C), x.dtype),
        grid_spec=pltpu.PrefetchScalarGridSpec(
            num_scalar_prefetch=0,
            grid=(B // block_b,),
            in_specs=[
                pl.BlockSpec((S, block_b, C), lambda g: (0, g, 0)),   # x
                pl.BlockSpec((C, 3 * C), lambda g: (0, 0)),           # fused qkv W
                pl.BlockSpec((1, 3 * C), lambda g: (0, 0)),           # fused qkv b
                pl.BlockSpec((C, C), lambda g: (0, 0)),               # out_proj W
                pl.BlockSpec((1, C), lambda g: (0, 0)),               # out_proj b
                pl.BlockSpec((C, C), lambda g: (0, 0)),               # fc1 W
                pl.BlockSpec((C, C), lambda g: (0, 0)),               # fc2 W
            ],
            out_specs=pl.BlockSpec((S, block_b, C), lambda g: (0, g, 0)),
            scratch_shapes=[pltpu.VMEM((S, C), jnp.float32)],
        ),
        compiler_params=pltpu.CompilerParams(
            dimension_semantics=("parallel",),
            vmem_limit_bytes=48 * 1024 * 1024),
        cost_estimate=cost,
    )(x, wqkv, bqkv, wo_t, bo, w1_t, w2_t)
    return out


def transformer_layer_ref(x, params, num_heads):
    """Pure-JAX reference mirroring the PyTorch forward exactly (unfused)."""
    S, B, C = x.shape
    H = num_heads
    Dh = C // H

    def lin(t, w):
        return jnp.einsum('sbc,dc->sbd', t, w, precision=_HIGHEST)

    q = lin(x, params["wq"])
    k = lin(x, params["wk"])
    v = lin(x, params["wv"])

    wi = params["in_proj_weight"]
    bi = params["in_proj_bias"]
    q = lin(q, wi[:C]) + bi[:C]
    k = lin(k, wi[C:2 * C]) + bi[C:2 * C]
    v = lin(v, wi[2 * C:]) + bi[2 * C:]
    q = q * (Dh ** -0.5)

    def split(t):  # (S, B, C) -> (B, H, S, Dh)
        return jnp.transpose(t.reshape(S, B, H, Dh), (1, 2, 0, 3))

    qh, kh, vh = split(q), split(k), split(v)
    s = jnp.einsum('bhqd,bhkd->bhqk', qh, kh, precision=_HIGHEST)
    p = jax.nn.softmax(s, axis=-1)
    ctx = jnp.einsum('bhqk,bhkd->bhqd', p, vh, precision=_HIGHEST)
    ctx = jnp.transpose(ctx, (2, 0, 1, 3)).reshape(S, B, C)

    attn_out = lin(ctx, params["wo"]) + params["bo"]
    y = attn_out + x
    z = lin(lin(y, params["w1"]), params["w2"]) + y
    return z


if __name__ == "__main__":
    key = jax.random.PRNGKey(0)
    S, B, C, H = 8, 2, 32, 4
    keys = jax.random.split(key, 10)
    sc = 1.0 / math.sqrt(C)
    params = {
        "wq": jax.random.normal(keys[0], (C, C), jnp.float32) * sc,
        "wk": jax.random.normal(keys[1], (C, C), jnp.float32) * sc,
        "wv": jax.random.normal(keys[2], (C, C), jnp.float32) * sc,
        "in_proj_weight": jax.random.normal(keys[3], (3 * C, C), jnp.float32) * sc,
        "in_proj_bias": jax.random.normal(keys[4], (3 * C,), jnp.float32) * 0.1,
        "wo": jax.random.normal(keys[5], (C, C), jnp.float32) * sc,
        "bo": jax.random.normal(keys[6], (C,), jnp.float32) * 0.1,
        "w1": jax.random.normal(keys[7], (C, C), jnp.float32) * sc,
        "w2": jax.random.normal(keys[8], (C, C), jnp.float32) * sc,
    }
    x = jax.random.normal(keys[9], (S, B, C), jnp.float32)

    ref = transformer_layer_ref(x, params, num_heads=H)

    # Fast path: bf16 MXU operands, f32 accumulation.
    out = jax.block_until_ready(transformer_layer(x, params, num_heads=H))
    assert out.shape == x.shape and out.dtype == x.dtype
    assert jnp.allclose(out, ref, atol=1e-1, rtol=5e-2), (
        f"bf16 path max abs err {float(jnp.max(jnp.abs(out - ref)))}")

    # Validation path: f32 operands, HIGHEST precision.
    out32 = jax.block_until_ready(
        transformer_layer(x, params, num_heads=H, matmul_dtype=jnp.float32))
    assert jnp.allclose(out32, ref, atol=1e-2, rtol=1e-2), (
        f"f32 path max abs err {float(jnp.max(jnp.abs(out32 - ref)))}")

    print("KERNEL_OK")
</pallas_src>

<mosaic_0001>
module attributes {stable_mosaic.version = 11 : i64} {
  func.func @_transformer_layer_kernel(%arg0: i32, %arg1: memref<8x2x32xf32, #tpu.memory_space<vmem>>, %arg2: memref<32x96xbf16, #tpu.memory_space<vmem>>, %arg3: memref<1x96xf32, #tpu.memory_space<vmem>>, %arg4: memref<32x32xbf16, #tpu.memory_space<vmem>>, %arg5: memref<1x32xf32, #tpu.memory_space<vmem>>, %arg6: memref<32x32xbf16, #tpu.memory_space<vmem>>, %arg7: memref<32x32xbf16, #tpu.memory_space<vmem>>, %arg8: memref<8x2x32xf32, #tpu.memory_space<vmem>>, %arg9: memref<8x32xf32, #tpu.memory_space<vmem>>) attributes {dimension_semantics = [#tpu.dimension_semantics<parallel>], iteration_bounds = array<i64: 1>, scalar_prefetch = 0 : i64, scratch_operands = 1 : i64, tpu.core_type = #tpu.core_type<tc>, window_params = [{transform_indices = @transform_0, window_bounds = array<i64: 8, 2, 32>}, {pipeline_mode = #tpu.pipeline_mode<synchronous>, transform_indices = @transform_1, window_bounds = array<i64: 32, 96>}, {pipeline_mode = #tpu.pipeline_mode<synchronous>, transform_indices = @transform_2, window_bounds = array<i64: 1, 96>}, {pipeline_mode = #tpu.pipeline_mode<synchronous>, transform_indices = @transform_3, window_bounds = array<i64: 32, 32>}, {pipeline_mode = #tpu.pipeline_mode<synchronous>, transform_indices = @transform_4, window_bounds = array<i64: 1, 32>}, {pipeline_mode = #tpu.pipeline_mode<synchronous>, transform_indices = @transform_5, window_bounds = array<i64: 32, 32>}, {pipeline_mode = #tpu.pipeline_mode<synchronous>, transform_indices = @transform_6, window_bounds = array<i64: 32, 32>}, {transform_indices = @transform_7, window_bounds = array<i64: 8, 2, 32>}]} {
    %c0 = arith.constant 0 : index
    %c0_0 = arith.constant 0 : index
    %0 = vector.load %arg2[%c0, %c0_0] : memref<32x96xbf16, #tpu.memory_space<vmem>>, vector<32x96xbf16>
    %c0_1 = arith.constant 0 : index
    %c0_2 = arith.constant 0 : index
    %1 = vector.load %arg3[%c0_1, %c0_2] : memref<1x96xf32, #tpu.memory_space<vmem>>, vector<1x96xf32>
    %c0_3 = arith.constant 0 : index
    %c0_4 = arith.constant 0 : index
    %2 = vector.load %arg4[%c0_3, %c0_4] : memref<32x32xbf16, #tpu.memory_space<vmem>>, vector<32x32xbf16>
    %c0_5 = arith.constant 0 : index
    %c0_6 = arith.constant 0 : index
    %3 = vector.load %arg5[%c0_5, %c0_6] : memref<1x32xf32, #tpu.memory_space<vmem>>, vector<1x32xf32>
    %c0_7 = arith.constant 0 : index
    %c0_8 = arith.constant 0 : index
    %4 = vector.load %arg6[%c0_7, %c0_8] : memref<32x32xbf16, #tpu.memory_space<vmem>>, vector<32x32xbf16>
    %c0_9 = arith.constant 0 : index
    %c0_10 = arith.constant 0 : index
    %5 = vector.load %arg7[%c0_9, %c0_10] : memref<32x32xbf16, #tpu.memory_space<vmem>>, vector<32x32xbf16>
    %c0_11 = arith.constant 0 : index
    %c0_12 = arith.constant 0 : index
    %c0_13 = arith.constant 0 : index
    %6 = vector.load %arg1[%c0_11, %c0_12, %c0_13] : memref<8x2x32xf32, #tpu.memory_space<vmem>>, vector<8x1x32xf32>
    %7 = vector.shape_cast %6 : vector<8x1x32xf32> to vector<8x32xf32>
    %8 = arith.truncf %7 : vector<8x32xf32> to vector<8x32xbf16>
    %cst = arith.constant dense<0.000000e+00> : vector<8x96xf32>
    %9 = tpu.matmul %8, %0, %cst {dimension_numbers = #tpu.dot_dimension_numbers<[1], [0], [0], [1], [0, 0, 1, 1], [], []>} : vector<8x32xbf16>, vector<32x96xbf16>, vector<8x96xf32> -> vector<8x96xf32>
    %10 = vector.broadcast %1 : vector<1x96xf32> to vector<8x96xf32>
    %11 = arith.addf %9, %10 : vector<8x96xf32>
    %12 = vector.extract_strided_slice %11 {offsets = [0, 0], sizes = [8, 8], strides = [1, 1]} : vector<8x96xf32> to vector<8x8xf32>
    %13 = vector.extract_strided_slice %11 {offsets = [0, 32], sizes = [8, 8], strides = [1, 1]} : vector<8x96xf32> to vector<8x8xf32>
    %14 = vector.extract_strided_slice %11 {offsets = [0, 64], sizes = [8, 8], strides = [1, 1]} : vector<8x96xf32> to vector<8x8xf32>
    %15 = arith.truncf %12 : vector<8x8xf32> to vector<8x8xbf16>
    %16 = arith.truncf %13 : vector<8x8xf32> to vector<8x8xbf16>
    %cst_14 = arith.constant dense<0.000000e+00> : vector<8x8xf32>
    %17 = tpu.matmul %15, %16, %cst_14 {dimension_numbers = #tpu.dot_dimension_numbers<[1], [1], [0], [0], [0, 0, 1, 0], [], []>} : vector<8x8xbf16>, vector<8x8xbf16>, vector<8x8xf32> -> vector<8x8xf32>
    %cst_15 = arith.constant dense<0xFF800000> : vector<8xf32>
    %18 = vector.multi_reduction <maximumf>, %17, %cst_15 [1] : vector<8x8xf32> to vector<8xf32>
    %19 = vector.shape_cast %18 : vector<8xf32> to vector<8x1xf32>
    %20 = vector.broadcast %19 : vector<8x1xf32> to vector<8x8xf32>
    %21 = arith.subf %17, %20 : vector<8x8xf32>
    %22 = math.exp %21 : vector<8x8xf32>
    %cst_16 = arith.constant dense<0.000000e+00> : vector<8xf32>
    %23 = vector.multi_reduction <add>, %22, %cst_16 [1] : vector<8x8xf32> to vector<8xf32>
    %24 = vector.shape_cast %23 : vector<8xf32> to vector<8x1xf32>
    %25 = tpu.reciprocal %24 {approx = true} : vector<8x1xf32> -> vector<8x1xf32>
    %26 = vector.broadcast %25 : vector<8x1xf32> to vector<8x8xf32>
    %27 = arith.mulf %22, %26 : vector<8x8xf32>
    %28 = arith.truncf %27 : vector<8x8xf32> to vector<8x8xbf16>
    %29 = arith.truncf %14 : vector<8x8xf32> to vector<8x8xbf16>
    %cst_17 = arith.constant dense<0.000000e+00> : vector<8x8xf32>
    %30 = tpu.matmul %28, %29, %cst_17 {dimension_numbers = #tpu.dot_dimension_numbers<[1], [0], [0], [1], [0, 0, 1, 1], [], []>} : vector<8x8xbf16>, vector<8x8xbf16>, vector<8x8xf32> -> vector<8x8xf32>
    %c0_18 = arith.constant 0 : index
    %c0_19 = arith.constant 0 : index
    %31 = vector.load %arg9[%c0_18, %c0_19] : memref<8x32xf32, #tpu.memory_space<vmem>>, vector<8x8xf32>
    tpu.vector_store %arg9[%c0_18, %c0_19], %30 {strides = array<i32>} : memref<8x32xf32, #tpu.memory_space<vmem>>, vector<8x8xf32>,
    %32 = vector.extract_strided_slice %11 {offsets = [0, 8], sizes = [8, 8], strides = [1, 1]} : vector<8x96xf32> to vector<8x8xf32>
    %33 = vector.extract_strided_slice %11 {offsets = [0, 40], sizes = [8, 8], strides = [1, 1]} : vector<8x96xf32> to vector<8x8xf32>
    %34 = vector.extract_strided_slice %11 {offsets = [0, 72], sizes = [8, 8], strides = [1, 1]} : vector<8x96xf32> to vector<8x8xf32>
    %35 = arith.truncf %32 : vector<8x8xf32> to vector<8x8xbf16>
    %36 = arith.truncf %33 : vector<8x8xf32> to vector<8x8xbf16>
    %cst_20 = arith.constant dense<0.000000e+00> : vector<8x8xf32>
    %37 = tpu.matmul %35, %36, %cst_20 {dimension_numbers = #tpu.dot_dimension_numbers<[1], [1], [0], [0], [0, 0, 1, 0], [], []>} : vector<8x8xbf16>, vector<8x8xbf16>, vector<8x8xf32> -> vector<8x8xf32>
    %cst_21 = arith.constant dense<0xFF800000> : vector<8xf32>
    %38 = vector.multi_reduction <maximumf>, %37, %cst_21 [1] : vector<8x8xf32> to vector<8xf32>
    %39 = vector.shape_cast %38 : vector<8xf32> to vector<8x1xf32>
    %40 = vector.broadcast %39 : vector<8x1xf32> to vector<8x8xf32>
    %41 = arith.subf %37, %40 : vector<8x8xf32>
    %42 = math.exp %41 : vector<8x8xf32>
    %cst_22 = arith.constant dense<0.000000e+00> : vector<8xf32>
    %43 = vector.multi_reduction <add>, %42, %cst_22 [1] : vector<8x8xf32> to vector<8xf32>
    %44 = vector.shape_cast %43 : vector<8xf32> to vector<8x1xf32>
    %45 = tpu.reciprocal %44 {approx = true} : vector<8x1xf32> -> vector<8x1xf32>
    %46 = vector.broadcast %45 : vector<8x1xf32> to vector<8x8xf32>
    %47 = arith.mulf %42, %46 : vector<8x8xf32>
    %48 = arith.truncf %47 : vector<8x8xf32> to vector<8x8xbf16>
    %49 = arith.truncf %34 : vector<8x8xf32> to vector<8x8xbf16>
    %cst_23 = arith.constant dense<0.000000e+00> : vector<8x8xf32>
    %50 = tpu.matmul %48, %49, %cst_23 {dimension_numbers = #tpu.dot_dimension_numbers<[1], [0], [0], [1], [0, 0, 1, 1], [], []>} : vector<8x8xbf16>, vector<8x8xbf16>, vector<8x8xf32> -> vector<8x8xf32>
    %c0_24 = arith.constant 0 : index
    %c8 = arith.constant 8 : index
    %51 = vector.load %arg9[%c0_24, %c8] : memref<8x32xf32, #tpu.memory_space<vmem>>, vector<8x8xf32>
    tpu.vector_store %arg9[%c0_24, %c8], %50 {strides = array<i32>} : memref<8x32xf32, #tpu.memory_space<vmem>>, vector<8x8xf32>,
    %52 = vector.extract_strided_slice %11 {offsets = [0, 16], sizes = [8, 8], strides = [1, 1]} : vector<8x96xf32> to vector<8x8xf32>
    %53 = vector.extract_strided_slice %11 {offsets = [0, 48], sizes = [8, 8], strides = [1, 1]} : vector<8x96xf32> to vector<8x8xf32>
    %54 = vector.extract_strided_slice %11 {offsets = [0, 80], sizes = [8, 8], strides = [1, 1]} : vector<8x96xf32> to vector<8x8xf32>
    %55 = arith.truncf %52 : vector<8x8xf32> to vector<8x8xbf16>
    %56 = arith.truncf %53 : vector<8x8xf32> to vector<8x8xbf16>
    %cst_25 = arith.constant dense<0.000000e+00> : vector<8x8xf32>
    %57 = tpu.matmul %55, %56, %cst_25 {dimension_numbers = #tpu.dot_dimension_numbers<[1], [1], [0], [0], [0, 0, 1, 0], [], []>} : vector<8x8xbf16>, vector<8x8xbf16>, vector<8x8xf32> -> vector<8x8xf32>
    %cst_26 = arith.constant dense<0xFF800000> : vector<8xf32>
    %58 = vector.multi_reduction <maximumf>, %57, %cst_26 [1] : vector<8x8xf32> to vector<8xf32>
    %59 = vector.shape_cast %58 : vector<8xf32> to vector<8x1xf32>
    %60 = vector.broadcast %59 : vector<8x1xf32> to vector<8x8xf32>
    %61 = arith.subf %57, %60 : vector<8x8xf32>
    %62 = math.exp %61 : vector<8x8xf32>
    %cst_27 = arith.constant dense<0.000000e+00> : vector<8xf32>
    %63 = vector.multi_reduction <add>, %62, %cst_27 [1] : vector<8x8xf32> to vector<8xf32>
    %64 = vector.shape_cast %63 : vector<8xf32> to vector<8x1xf32>
    %65 = tpu.reciprocal %64 {approx = true} : vector<8x1xf32> -> vector<8x1xf32>
    %66 = vector.broadcast %65 : vector<8x1xf32> to vector<8x8xf32>
    %67 = arith.mulf %62, %66 : vector<8x8xf32>
    %68 = arith.truncf %67 : vector<8x8xf32> to vector<8x8xbf16>
    %69 = arith.truncf %54 : vector<8x8xf32> to vector<8x8xbf16>
    %cst_28 = arith.constant dense<0.000000e+00> : vector<8x8xf32>
    %70 = tpu.matmul %68, %69, %cst_28 {dimension_numbers = #tpu.dot_dimension_numbers<[1], [0], [0], [1], [0, 0, 1, 1], [], []>} : vector<8x8xbf16>, vector<8x8xbf16>, vector<8x8xf32> -> vector<8x8xf32>
    %c0_29 = arith.constant 0 : index
    %c16 = arith.constant 16 : index
    %71 = vector.load %arg9[%c0_29, %c16] : memref<8x32xf32, #tpu.memory_space<vmem>>, vector<8x8xf32>
    tpu.vector_store %arg9[%c0_29, %c16], %70 {strides = array<i32>} : memref<8x32xf32, #tpu.memory_space<vmem>>, vector<8x8xf32>,
    %72 = vector.extract_strided_slice %11 {offsets = [0, 24], sizes = [8, 8], strides = [1, 1]} : vector<8x96xf32> to vector<8x8xf32>
    %73 = vector.extract_strided_slice %11 {offsets = [0, 56], sizes = [8, 8], strides = [1, 1]} : vector<8x96xf32> to vector<8x8xf32>
    %74 = vector.extract_strided_slice %11 {offsets = [0, 88], sizes = [8, 8], strides = [1, 1]} : vector<8x96xf32> to vector<8x8xf32>
    %75 = arith.truncf %72 : vector<8x8xf32> to vector<8x8xbf16>
    %76 = arith.truncf %73 : vector<8x8xf32> to vector<8x8xbf16>
    %cst_30 = arith.constant dense<0.000000e+00> : vector<8x8xf32>
    %77 = tpu.matmul %75, %76, %cst_30 {dimension_numbers = #tpu.dot_dimension_numbers<[1], [1], [0], [0], [0, 0, 1, 0], [], []>} : vector<8x8xbf16>, vector<8x8xbf16>, vector<8x8xf32> -> vector<8x8xf32>
    %cst_31 = arith.constant dense<0xFF800000> : vector<8xf32>
    %78 = vector.multi_reduction <maximumf>, %77, %cst_31 [1] : vector<8x8xf32> to vector<8xf32>
    %79 = vector.shape_cast %78 : vector<8xf32> to vector<8x1xf32>
    %80 = vector.broadcast %79 : vector<8x1xf32> to vector<8x8xf32>
    %81 = arith.subf %77, %80 : vector<8x8xf32>
    %82 = math.exp %81 : vector<8x8xf32>
    %cst_32 = arith.constant dense<0.000000e+00> : vector<8xf32>
    %83 = vector.multi_reduction <add>, %82, %cst_32 [1] : vector<8x8xf32> to vector<8xf32>
    %84 = vector.shape_cast %83 : vector<8xf32> to vector<8x1xf32>
    %85 = tpu.reciprocal %84 {approx = true} : vector<8x1xf32> -> vector<8x1xf32>
    %86 = vector.broadcast %85 : vector<8x1xf32> to vector<8x8xf32>
    %87 = arith.mulf %82, %86 : vector<8x8xf32>
    %88 = arith.truncf %87 : vector<8x8xf32> to vector<8x8xbf16>
    %89 = arith.truncf %74 : vector<8x8xf32> to vector<8x8xbf16>
    %cst_33 = arith.constant dense<0.000000e+00> : vector<8x8xf32>
    %90 = tpu.matmul %88, %89, %cst_33 {dimension_numbers = #tpu.dot_dimension_numbers<[1], [0], [0], [1], [0, 0, 1, 1], [], []>} : vector<8x8xbf16>, vector<8x8xbf16>, vector<8x8xf32> -> vector<8x8xf32>
    %c0_34 = arith.constant 0 : index
    %c24 = arith.constant 24 : index
    %91 = vector.load %arg9[%c0_34, %c24] : memref<8x32xf32, #tpu.memory_space<vmem>>, vector<8x8xf32>
    tpu.vector_store %arg9[%c0_34, %c24], %90 {strides = array<i32>} : memref<8x32xf32, #tpu.memory_space<vmem>>, vector<8x8xf32>,
    %c0_35 = arith.constant 0 : index
    %c0_36 = arith.constant 0 : index
    %92 = vector.load %arg9[%c0_35, %c0_36] : memref<8x32xf32, #tpu.memory_space<vmem>>, vector<8x32xf32>
    %93 = arith.truncf %92 : vector<8x32xf32> to vector<8x32xbf16>
    %cst_37 = arith.constant dense<0.000000e+00> : vector<8x32xf32>
    %94 = tpu.matmul %93, %2, %cst_37 {dimension_numbers = #tpu.dot_dimension_numbers<[1], [0], [0], [1], [0, 0, 1, 1], [], []>} : vector<8x32xbf16>, vector<32x32xbf16>, vector<8x32xf32> -> vector<8x32xf32>
    %95 = vector.broadcast %3 : vector<1x32xf32> to vector<8x32xf32>
    %96 = arith.addf %94, %95 : vector<8x32xf32>
    %97 = arith.addf %96, %7 : vector<8x32xf32>
    %98 = arith.truncf %97 : vector<8x32xf32> to vector<8x32xbf16>
    %cst_38 = arith.constant dense<0.000000e+00> : vector<8x32xf32>
    %99 = tpu.matmul %98, %4, %cst_38 {dimension_numbers = #tpu.dot_dimension_numbers<[1], [0], [0], [1], [0, 0, 1, 1], [], []>} : vector<8x32xbf16>, vector<32x32xbf16>, vector<8x32xf32> -> vector<8x32xf32>
    %100 = arith.truncf %99 : vector<8x32xf32> to vector<8x32xbf16>
    %cst_39 = arith.constant dense<0.000000e+00> : vector<8x32xf32>
    %101 = tpu.matmul %100, %5, %cst_39 {dimension_numbers = #tpu.dot_dimension_numbers<[1], [0], [0], [1], [0, 0, 1, 1], [], []>} : vector<8x32xbf16>, vector<32x32xbf16>, vector<8x32xf32> -> vector<8x32xf32>
    %102 = arith.addf %101, %97 : vector<8x32xf32>
    %103 = vector.shape_cast %102 : vector<8x32xf32> to vector<8x1x32xf32>
    %c0_40 = arith.constant 0 : index
    %c0_41 = arith.constant 0 : index
    %c0_42 = arith.constant 0 : index
    %104 = vector.load %arg8[%c0_40, %c0_41, %c0_42] : memref<8x2x32xf32, #tpu.memory_space<vmem>>, vector<8x1x32xf32>
    tpu.vector_store %arg8[%c0_40, %c0_41, %c0_42], %103 {strides = array<i32>} : memref<8x2x32xf32, #tpu.memory_space<vmem>>, vector<8x1x32xf32>,
    %c0_43 = arith.constant 0 : index
    %c1 = arith.constant 1 : index
    %c0_44 = arith.constant 0 : index
    %105 = vector.load %arg1[%c0_43, %c1, %c0_44] : memref<8x2x32xf32, #tpu.memory_space<vmem>>, vector<8x1x32xf32>
    %106 = vector.shape_cast %105 : vector<8x1x32xf32> to vector<8x32xf32>
    %107 = arith.truncf %106 : vector<8x32xf32> to vector<8x32xbf16>
    %cst_45 = arith.constant dense<0.000000e+00> : vector<8x96xf32>
    %108 = tpu.matmul %107, %0, %cst_45 {dimension_numbers = #tpu.dot_dimension_numbers<[1], [0], [0], [1], [0, 0, 1, 1], [], []>} : vector<8x32xbf16>, vector<32x96xbf16>, vector<8x96xf32> -> vector<8x96xf32>
    %109 = vector.broadcast %1 : vector<1x96xf32> to vector<8x96xf32>
    %110 = arith.addf %108, %109 : vector<8x96xf32>
    %111 = vector.extract_strided_slice %110 {offsets = [0, 0], sizes = [8, 8], strides = [1, 1]} : vector<8x96xf32> to vector<8x8xf32>
    %112 = vector.extract_strided_slice %110 {offsets = [0, 32], sizes = [8, 8], strides = [1, 1]} : vector<8x96xf32> to vector<8x8xf32>
    %113 = vector.extract_strided_slice %110 {offsets = [0, 64], sizes = [8, 8], strides = [1, 1]} : vector<8x96xf32> to vector<8x8xf32>
    %114 = arith.truncf %111 : vector<8x8xf32> to vector<8x8xbf16>
    %115 = arith.truncf %112 : vector<8x8xf32> to vector<8x8xbf16>
    %cst_46 = arith.constant dense<0.000000e+00> : vector<8x8xf32>
    %116 = tpu.matmul %114, %115, %cst_46 {dimension_numbers = #tpu.dot_dimension_numbers<[1], [1], [0], [0], [0, 0, 1, 0], [], []>} : vector<8x8xbf16>, vector<8x8xbf16>, vector<8x8xf32> -> vector<8x8xf32>
    %cst_47 = arith.constant dense<0xFF800000> : vector<8xf32>
    %117 = vector.multi_reduction <maximumf>, %116, %cst_47 [1] : vector<8x8xf32> to vector<8xf32>
    %118 = vector.shape_cast %117 : vector<8xf32> to vector<8x1xf32>
    %119 = vector.broadcast %118 : vector<8x1xf32> to vector<8x8xf32>
    %120 = arith.subf %116, %119 : vector<8x8xf32>
    %121 = math.exp %120 : vector<8x8xf32>
    %cst_48 = arith.constant dense<0.000000e+00> : vector<8xf32>
    %122 = vector.multi_reduction <add>, %121, %cst_48 [1] : vector<8x8xf32> to vector<8xf32>
    %123 = vector.shape_cast %122 : vector<8xf32> to vector<8x1xf32>
    %124 = tpu.reciprocal %123 {approx = true} : vector<8x1xf32> -> vector<8x1xf32>
    %125 = vector.broadcast %124 : vector<8x1xf32> to vector<8x8xf32>
    %126 = arith.mulf %121, %125 : vector<8x8xf32>
    %127 = arith.truncf %126 : vector<8x8xf32> to vector<8x8xbf16>
    %128 = arith.truncf %113 : vector<8x8xf32> to vector<8x8xbf16>
    %cst_49 = arith.constant dense<0.000000e+00> : vector<8x8xf32>
    %129 = tpu.matmul %127, %128, %cst_49 {dimension_numbers = #tpu.dot_dimension_numbers<[1], [0], [0], [1], [0, 0, 1, 1], [], []>} : vector<8x8xbf16>, vector<8x8xbf16>, vector<8x8xf32> -> vector<8x8xf32>
    %c0_50 = arith.constant 0 : index
    %c0_51 = arith.constant 0 : index
    %130 = vector.load %arg9[%c0_50, %c0_51] : memref<8x32xf32, #tpu.memory_space<vmem>>, vector<8x8xf32>
    tpu.vector_store %arg9[%c0_50, %c0_51], %129 {strides = array<i32>} : memref<8x32xf32, #tpu.memory_space<vmem>>, vector<8x8xf32>,
    %131 = vector.extract_strided_slice %110 {offsets = [0, 8], sizes = [8, 8], strides = [1, 1]} : vector<8x96xf32> to vector<8x8xf32>
    %132 = vector.extract_strided_slice %110 {offsets = [0, 40], sizes = [8, 8], strides = [1, 1]} : vector<8x96xf32> to vector<8x8xf32>
    %133 = vector.extract_strided_slice %110 {offsets = [0, 72], sizes = [8, 8], strides = [1, 1]} : vector<8x96xf32> to vector<8x8xf32>
    %134 = arith.truncf %131 : vector<8x8xf32> to vector<8x8xbf16>
    %135 = arith.truncf %132 : vector<8x8xf32> to vector<8x8xbf16>
    %cst_52 = arith.constant dense<0.000000e+00> : vector<8x8xf32>
    %136 = tpu.matmul %134, %135, %cst_52 {dimension_numbers = #tpu.dot_dimension_numbers<[1], [1], [0], [0], [0, 0, 1, 0], [], []>} : vector<8x8xbf16>, vector<8x8xbf16>, vector<8x8xf32> -> vector<8x8xf32>
    %cst_53 = arith.constant dense<0xFF800000> : vector<8xf32>
    %137 = vector.multi_reduction <maximumf>, %136, %cst_53 [1] : vector<8x8xf32> to vector<8xf32>
    %138 = vector.shape_cast %137 : vector<8xf32> to vector<8x1xf32>
    %139 = vector.broadcast %138 : vector<8x1xf32> to vector<8x8xf32>
    %140 = arith.subf %136, %139 : vector<8x8xf32>
    %141 = math.exp %140 : vector<8x8xf32>
    %cst_54 = arith.constant dense<0.000000e+00> : vector<8xf32>
    %142 = vector.multi_reduction <add>, %141, %cst_54 [1] : vector<8x8xf32> to vector<8xf32>
    %143 = vector.shape_cast %142 : vector<8xf32> to vector<8x1xf32>
    %144 = tpu.reciprocal %143 {approx = true} : vector<8x1xf32> -> vector<8x1xf32>
    %145 = vector.broadcast %144 : vector<8x1xf32> to vector<8x8xf32>
    %146 = arith.mulf %141, %145 : vector<8x8xf32>
    %147 = arith.truncf %146 : vector<8x8xf32> to vector<8x8xbf16>
    %148 = arith.truncf %133 : vector<8x8xf32> to vector<8x8xbf16>
    %cst_55 = arith.constant dense<0.000000e+00> : vector<8x8xf32>
    %149 = tpu.matmul %147, %148, %cst_55 {dimension_numbers = #tpu.dot_dimension_numbers<[1], [0], [0], [1], [0, 0, 1, 1], [], []>} : vector<8x8xbf16>, vector<8x8xbf16>, vector<8x8xf32> -> vector<8x8xf32>
    %c0_56 = arith.constant 0 : index
    %c8_57 = arith.constant 8 : index
    %150 = vector.load %arg9[%c0_56, %c8_57] : memref<8x32xf32, #tpu.memory_space<vmem>>, vector<8x8xf32>
    tpu.vector_store %arg9[%c0_56, %c8_57], %149 {strides = array<i32>} : memref<8x32xf32, #tpu.memory_space<vmem>>, vector<8x8xf32>,
    %151 = vector.extract_strided_slice %110 {offsets = [0, 16], sizes = [8, 8], strides = [1, 1]} : vector<8x96xf32> to vector<8x8xf32>
    %152 = vector.extract_strided_slice %110 {offsets = [0, 48], sizes = [8, 8], strides = [1, 1]} : vector<8x96xf32> to vector<8x8xf32>
    %153 = vector.extract_strided_slice %110 {offsets = [0, 80], sizes = [8, 8], strides = [1, 1]} : vector<8x96xf32> to vector<8x8xf32>
    %154 = arith.truncf %151 : vector<8x8xf32> to vector<8x8xbf16>
    %155 = arith.truncf %152 : vector<8x8xf32> to vector<8x8xbf16>
    %cst_58 = arith.constant dense<0.000000e+00> : vector<8x8xf32>
    %156 = tpu.matmul %154, %155, %cst_58 {dimension_numbers = #tpu.dot_dimension_numbers<[1], [1], [0], [0], [0, 0, 1, 0], [], []>} : vector<8x8xbf16>, vector<8x8xbf16>, vector<8x8xf32> -> vector<8x8xf32>
    %cst_59 = arith.constant dense<0xFF800000> : vector<8xf32>
    %157 = vector.multi_reduction <maximumf>, %156, %cst_59 [1] : vector<8x8xf32> to vector<8xf32>
    %158 = vector.shape_cast %157 : vector<8xf32> to vector<8x1xf32>
    %159 = vector.broadcast %158 : vector<8x1xf32> to vector<8x8xf32>
    %160 = arith.subf %156, %159 : vector<8x8xf32>
    %161 = math.exp %160 : vector<8x8xf32>
    %cst_60 = arith.constant dense<0.000000e+00> : vector<8xf32>
    %162 = vector.multi_reduction <add>, %161, %cst_60 [1] : vector<8x8xf32> to vector<8xf32>
    %163 = vector.shape_cast %162 : vector<8xf32> to vector<8x1xf32>
    %164 = tpu.reciprocal %163 {approx = true} : vector<8x1xf32> -> vector<8x1xf32>
    %165 = vector.broadcast %164 : vector<8x1xf32> to vector<8x8xf32>
    %166 = arith.mulf %161, %165 : vector<8x8xf32>
    %167 = arith.truncf %166 : vector<8x8xf32> to vector<8x8xbf16>
    %168 = arith.truncf %153 : vector<8x8xf32> to vector<8x8xbf16>
    %cst_61 = arith.constant dense<0.000000e+00> : vector<8x8xf32>
    %169 = tpu.matmul %167, %168, %cst_61 {dimension_numbers = #tpu.dot_dimension_numbers<[1], [0], [0], [1], [0, 0, 1, 1], [], []>} : vector<8x8xbf16>, vector<8x8xbf16>, vector<8x8xf32> -> vector<8x8xf32>
    %c0_62 = arith.constant 0 : index
    %c16_63 = arith.constant 16 : index
    %170 = vector.load %arg9[%c0_62, %c16_63] : memref<8x32xf32, #tpu.memory_space<vmem>>, vector<8x8xf32>
    tpu.vector_store %arg9[%c0_62, %c16_63], %169 {strides = array<i32>} : memref<8x32xf32, #tpu.memory_space<vmem>>, vector<8x8xf32>,
    %171 = vector.extract_strided_slice %110 {offsets = [0, 24], sizes = [8, 8], strides = [1, 1]} : vector<8x96xf32> to vector<8x8xf32>
    %172 = vector.extract_strided_slice %110 {offsets = [0, 56], sizes = [8, 8], strides = [1, 1]} : vector<8x96xf32> to vector<8x8xf32>
    %173 = vector.extract_strided_slice %110 {offsets = [0, 88], sizes = [8, 8], strides = [1, 1]} : vector<8x96xf32> to vector<8x8xf32>
    %174 = arith.truncf %171 : vector<8x8xf32> to vector<8x8xbf16>
    %175 = arith.truncf %172 : vector<8x8xf32> to vector<8x8xbf16>
    %cst_64 = arith.constant dense<0.000000e+00> : vector<8x8xf32>
    %176 = tpu.matmul %174, %175, %cst_64 {dimension_numbers = #tpu.dot_dimension_numbers<[1], [1], [0], [0], [0, 0, 1, 0], [], []>} : vector<8x8xbf16>, vector<8x8xbf16>, vector<8x8xf32> -> vector<8x8xf32>
    %cst_65 = arith.constant dense<0xFF800000> : vector<8xf32>
    %177 = vector.multi_reduction <maximumf>, %176, %cst_65 [1] : vector<8x8xf32> to vector<8xf32>
    %178 = vector.shape_cast %177 : vector<8xf32> to vector<8x1xf32>
    %179 = vector.broadcast %178 : vector<8x1xf32> to vector<8x8xf32>
    %180 = arith.subf %176, %179 : vector<8x8xf32>
    %181 = math.exp %180 : vector<8x8xf32>
    %cst_66 = arith.constant dense<0.000000e+00> : vector<8xf32>
    %182 = vector.multi_reduction <add>, %181, %cst_66 [1] : vector<8x8xf32> to vector<8xf32>
    %183 = vector.shape_cast %182 : vector<8xf32> to vector<8x1xf32>
    %184 = tpu.reciprocal %183 {approx = true} : vector<8x1xf32> -> vector<8x1xf32>
    %185 = vector.broadcast %184 : vector<8x1xf32> to vector<8x8xf32>
    %186 = arith.mulf %181, %185 : vector<8x8xf32>
    %187 = arith.truncf %186 : vector<8x8xf32> to vector<8x8xbf16>
    %188 = arith.truncf %173 : vector<8x8xf32> to vector<8x8xbf16>
    %cst_67 = arith.constant dense<0.000000e+00> : vector<8x8xf32>
    %189 = tpu.matmul %187, %188, %cst_67 {dimension_numbers = #tpu.dot_dimension_numbers<[1], [0], [0], [1], [0, 0, 1, 1], [], []>} : vector<8x8xbf16>, vector<8x8xbf16>, vector<8x8xf32> -> vector<8x8xf32>
    %c0_68 = arith.constant 0 : index
    %c24_69 = arith.constant 24 : index
    %190 = vector.load %arg9[%c0_68, %c24_69] : memref<8x32xf32, #tpu.memory_space<vmem>>, vector<8x8xf32>
    tpu.vector_store %arg9[%c0_68, %c24_69], %189 {strides = array<i32>} : memref<8x32xf32, #tpu.memory_space<vmem>>, vector<8x8xf32>,
    %c0_70 = arith.constant 0 : index
    %c0_71 = arith.constant 0 : index
    %191 = vector.load %arg9[%c0_70, %c0_71] : memref<8x32xf32, #tpu.memory_space<vmem>>, vector<8x32xf32>
    %192 = arith.truncf %191 : vector<8x32xf32> to vector<8x32xbf16>
    %cst_72 = arith.constant dense<0.000000e+00> : vector<8x32xf32>
    %193 = tpu.matmul %192, %2, %cst_72 {dimension_numbers = #tpu.dot_dimension_numbers<[1], [0], [0], [1], [0, 0, 1, 1], [], []>} : vector<8x32xbf16>, vector<32x32xbf16>, vector<8x32xf32> -> vector<8x32xf32>
    %194 = vector.broadcast %3 : vector<1x32xf32> to vector<8x32xf32>
    %195 = arith.addf %193, %194 : vector<8x32xf32>
    %196 = arith.addf %195, %106 : vector<8x32xf32>
    %197 = arith.truncf %196 : vector<8x32xf32> to vector<8x32xbf16>
    %cst_73 = arith.constant dense<0.000000e+00> : vector<8x32xf32>
    %198 = tpu.matmul %197, %4, %cst_73 {dimension_numbers = #tpu.dot_dimension_numbers<[1], [0], [0], [1], [0, 0, 1, 1], [], []>} : vector<8x32xbf16>, vector<32x32xbf16>, vector<8x32xf32> -> vector<8x32xf32>
    %199 = arith.truncf %198 : vector<8x32xf32> to vector<8x32xbf16>
    %cst_74 = arith.constant dense<0.000000e+00> : vector<8x32xf32>
    %200 = tpu.matmul %199, %5, %cst_74 {dimension_numbers = #tpu.dot_dimension_numbers<[1], [0], [0], [1], [0, 0, 1, 1], [], []>} : vector<8x32xbf16>, vector<32x32xbf16>, vector<8x32xf32> -> vector<8x32xf32>
    %201 = arith.addf %200, %196 : vector<8x32xf32>
    %202 = vector.shape_cast %201 : vector<8x32xf32> to vector<8x1x32xf32>
    %c0_75 = arith.constant 0 : index
    %c1_76 = arith.constant 1 : index
    %c0_77 = arith.constant 0 : index
    %203 = vector.load %arg8[%c0_75, %c1_76, %c0_77] : memref<8x2x32xf32, #tpu.memory_space<vmem>>, vector<8x1x32xf32>
    tpu.vector_store %arg8[%c0_75, %c1_76, %c0_77], %202 {strides = array<i32>} : memref<8x2x32xf32, #tpu.memory_space<vmem>>, vector<8x1x32xf32>,
    return
  }
  func.func @transform_0(%arg0: i32) -> (i32, i32, i32) {
    %c0_i32 = arith.constant 0 : i32
    %c0_i32_0 = arith.constant 0 : i32
    %c0_i32_1 = arith.constant 0 : i32
    return %c0_i32, %arg0, %c0_i32_0 : i32, i32, i32
  }
  func.func @transform_1(%arg0: i32) -> (i32, i32) {
    %c0_i32 = arith.constant 0 : i32
    %c0_i32_0 = arith.constant 0 : i32
    %c0_i32_1 = arith.constant 0 : i32
    return %c0_i32, %c0_i32_0 : i32, i32
  }
  func.func @transform_2(%arg0: i32) -> (i32, i32) {
    %c0_i32 = arith.constant 0 : i32
    %c0_i32_0 = arith.constant 0 : i32
    %c0_i32_1 = arith.constant 0 : i32
    return %c0_i32, %c0_i32_0 : i32, i32
  }
  func.func @transform_3(%arg0: i32) -> (i32, i32) {
    %c0_i32 = arith.constant 0 : i32
    %c0_i32_0 = arith.constant 0 : i32
    %c0_i32_1 = arith.constant 0 : i32
    return %c0_i32, %c0_i32_0 : i32, i32
  }
  func.func @transform_4(%arg0: i32) -> (i32, i32) {
    %c0_i32 = arith.constant 0 : i32
    %c0_i32_0 = arith.constant 0 : i32
    %c0_i32_1 = arith.constant 0 : i32
    return %c0_i32, %c0_i32_0 : i32, i32
  }
  func.func @transform_5(%arg0: i32) -> (i32, i32) {
    %c0_i32 = arith.constant 0 : i32
    %c0_i32_0 = arith.constant 0 : i32
    %c0_i32_1 = arith.constant 0 : i32
    return %c0_i32, %c0_i32_0 : i32, i32
  }
  func.func @transform_6(%arg0: i32) -> (i32, i32) {
    %c0_i32 = arith.constant 0 : i32
    %c0_i32_0 = arith.constant 0 : i32
    %c0_i32_1 = arith.constant 0 : i32
    return %c0_i32, %c0_i32_0 : i32, i32
  }
  func.func @transform_7(%arg0: i32) -> (i32, i32, i32) {
    %c0_i32 = arith.constant 0 : i32
    %c0_i32_0 = arith.constant 0 : i32
    %c0_i32_1 = arith.constant 0 : i32
    return %c0_i32, %arg0, %c0_i32_0 : i32, i32, i32
  }
}

</mosaic_0001>

<bundles_post_ra>
// kernel: tpu_custom_call.1
= control target key start
LH: loop header
LB: loop body
LE: loop exit
PB: predicated region body
PF: predicated region fallthrough
CT: control target
= control target key end

     0   :  { %12 = vsyncpa [#allocation4], 0  ;;  %s1667_s0 = inlined_call_operand.hbm [shape: f32[8,2,32], index: 0, kind: input, shape index: {}]   ;;  %s1668_s1 = inlined_call_operand.hbm [shape: bf16[32,96], index: 1, kind: input, shape index: {}]   ;;  %s1669_s2 = inlined_call_operand.vmem [shape: f32[1,96], index: 2, kind: input, shape index: {}]   ;;  %s1670_s3 = inlined_call_operand.hbm [shape: bf16[32,32], index: 3, kind: input, shape index: {}]   ;;  %s1671_s4 = inlined_call_operand.vmem [shape: f32[1,32], index: 4, kind: input, shape index: {}]   ;;  %s1672_s5 = inlined_call_operand.hbm [shape: bf16[32,32], index: 5, kind: input, shape index: {}]   ;;  %s1673_s6 = inlined_call_operand.hbm [shape: bf16[32,32], index: 6, kind: input, shape index: {}]   ;;  %s1674_s7 = inlined_call_operand.hbm [shape: f32[8,2,32], index: 7, kind: output, shape index: {}]  }
   0x1   :  { %13 = vsyncpa [#allocation7], 0 }
   0x2   :  { %14 = vsyncpa [#allocation10], 0  ;;  %s33_s26 = sshll.u32 %s1668_s1, 4  ;;  %s34_s26 = int_to_ptr.hbm [resolvable:$true] %s33_s26 }
   0x3   :  { %15 = vsyncpa [#allocation5], 0  ;;  %s1290_s27 = smov [#allocation6]   ;;  %s63_s8 = sshll.u32 %s1672_s5, 4  ;;  %s64_s8 = int_to_ptr.hbm [resolvable:$true] %s63_s8 }
   0x4   :  { %s35_s28 = sshll.u32 %s1290_s27, 4  ;;  %s1291_s9 = smov 64   ;;  %s36_s28 = int_to_ptr.vmem [resolvable:$true] %s35_s28 }
   0x5   :  { %s1292_s10 = smov 4   ;;  %s1293_s11 = smov [#allocation9]  }
   0x6   :  { %41 = dma.hbm_to_vmem [thread:$0]  %s34_s26, 256, %s36_s28, [#allocation7], %s1291_s9, %s1291_s9, %s1292_s10  }
   0x7   :  { %s65_s12 = sshll.u32 %s1293_s11, 4  ;;  %s20_s14 = sshll.u32 %s1667_s0, 4  ;;  %s66_s12 = int_to_ptr.vmem [resolvable:$true] %s65_s12  ;;  %s21_s14 = int_to_ptr.hbm [resolvable:$true] %s20_s14 }
   0x8   :  { %71 = dma.hbm_to_vmem [thread:$0]  %s64_s8, 256, %s66_s12, [#allocation10], %s1291_s9, %s1291_s9, %s1292_s10  }
   0x9   :  { %s1294_s5 = smov [#allocation3]   ;;  %s48_s18 = sshll.u32 %s1670_s3, 4  ;;  %s49_s18 = int_to_ptr.hbm [resolvable:$true] %s48_s18 }
   0xa   :  { %s22_s15 = sshll.u32 %s1294_s5, 4  ;;  %s1295_s19 = smov 32   ;;  %s23_s15 = int_to_ptr.vmem [resolvable:$true] %s22_s15 }
   0xb   :  { %s1296_s20 = smov 2   ;;  %s1297_s0 = smov [#allocation8]  }
   0xc   :  { %28 = dma.hbm_to_vmem [thread:$0]  %s21_s14, 256, %s23_s15, [#allocation4], %s1295_s19, %s1295_s19, %s1296_s20  }
   0xd   :  { %s50_s21 = sshll.u32 %s1297_s0, 4  ;;  %s76_s24 = sshll.u32 %s1673_s6, 4  ;;  %s51_s21 = int_to_ptr.vmem [resolvable:$true] %s50_s21  ;;  %s77_s24 = int_to_ptr.hbm [resolvable:$true] %s76_s24 }
   0xe   :  { %56 = dma.hbm_to_vmem [thread:$0]  %s49_s18, 256, %s51_s21, [#allocation7], %s1291_s9, %s1291_s9, %s1292_s10  }
   0xf   :  { %s1298_s3 = smov [#allocation11]  }
  0x10   :  { %s78_s25 = sshll.u32 %s1298_s3, 4  ;;  %s79_s25 = int_to_ptr.vmem [resolvable:$true] %s78_s25 }
  0x11   :  { %84 = dma.hbm_to_vmem [thread:$0]  %s77_s24, 256, %s79_s25, [#allocation10], %s1291_s9, %s1291_s9, %s1292_s10  }
  0x12   :  { %1282 = dma.done.wait [#allocation4], 256  }
  0x13   :  { %1283 = vsyncadd [#allocation4], 4294967040 }
  0x14   :  { %1284 = dma.done.wait [#allocation7], 512  }
  0x15   :  { %1285 = vsyncadd [#allocation7], 4294966784 }
  0x16   :  { %1286 = dma.done.wait [#allocation10], 512  }
  0x17   :  { %1287 = vsyncadd [#allocation10], 4294966784  ;;  %v1383_v0 = vld [vmem:[#allocation6 + $0x8] sm:$0xff]  ;;  %v1385_v1 = vld [vmem:[#allocation6] sm:$0xff]  ;;  %vm160_vm0 = vcmask 1041409   ;;  %vm163_vm1 = vcmask 1042434  }
  0x18   :  { %v1387_v2 = vld [vmem:[#allocation3] sm:$0x1]  ;;  %v1389_v3 = vld [vmem:[#allocation3 + $0x2] sm:$0x1]  ;;  %v1391_v4 = vld [vmem:[#allocation3 + $0x4] sm:$0x1]  ;;  %203 = vmatpush.bf16.msra.mxu0 %v1383_v0 }
  0x19   :  { %v1393_v5 = vld [vmem:[#allocation3 + $0x6] sm:$0x1]  ;;  %v132_v6 = vpack.c.bf16 %v1387_v2, %v1387_v2  ;;  %v1398_v7 = vld [vmem:[#allocation3 + $0x8] sm:$0x1]  ;;  %v1400_v8 = vld [vmem:[#allocation3 + $0xa] sm:$0x1]  ;;  %v133_v10 = vpack.c.bf16 %v1389_v3, %v1389_v3  ;;  %v134_v11 = vpack.c.bf16 %v1391_v4, %v1391_v4 }
  0x1a   :  { %v1402_v9 = vld [vmem:[#allocation3 + $0xc] sm:$0x1]  ;;  %v135_v12 = vpack.c.bf16 %v1393_v5, %v1393_v5  ;;  %v1410_v13 = vld [vmem:[#allocation3 + $0xe] sm:$0x1]  ;;  %v136_v14 = vpack.c.bf16 %v1398_v7, %v1398_v7  ;;  %v137_v15 = vpack.c.bf16 %v1400_v8, %v1400_v8  ;;  %vm166_vm2 = vcmask 1043459   ;;  %s1299_s27 = smov 104  }
  0x1b   :  { %v138_v16 = vpack.c.bf16 %v1402_v9, %v1402_v9  ;;  %v151_v17 = vunpack.c.l.b16 %v132_v6  ;;  %v139_v18 = vpack.c.bf16 %v1410_v13, %v1410_v13  ;;  %v152_v19 = vunpack.c.l.b16 %v133_v10  ;;  %v1432_v41 = vld [vmem:[%s1669_s2] ss:$0 sm:$0xff]  ;;  %s1300_s28 = smov 120   ;;  %s1301_s29 = smov 96  }
  0x1c   :  { %v153_v20 = vunpack.c.l.b16 %v134_v11  ;;  %v154_v21 = vunpack.c.l.b16 %v135_v12  ;;  %v155_v22 = vunpack.c.l.b16 %v136_v14  ;;  %v156_v23 = vunpack.c.l.b16 %v137_v15  ;;  %204 = vmatpush.bf16.msra.mxu0 %v1385_v1  ;;  %s1302_s2 = smov 80   ;;  %s1303_s30 = smov 72  }
  0x1d   :  { %v157_v24 = vunpack.c.l.b16 %v138_v16  ;;  %v158_v25 = vunpack.c.l.b16 %v139_v18  ;;  %v159_v26 = vrot.slane %v152_v19, 7  ;;  %vm169_vm3 = vcmask 1044484   ;;  %s1304_s8 = smov 88   ;;  %s1305_s10 = smov 112  }
  0x1e   :  { %v162_v27 = vrot.slane %v153_v20, 6  ;;  %v165_v28 = vrot.slane %v154_v21, 5  ;;  %v168_v29 = vrot.slane %v155_v22, 4  ;;  %v171_v31 = vrot.slane %v156_v23, 3  ;;  %s1306_s11 = smov 40   ;;  %s1307_s12 = smov 56  }
  0x1f   :  { %v161_v30 = vsel %vm160_vm0, %v159_v26, %v151_v17  ;;  %vm172_vm4 = vcmask 1045509   ;;  %v174_v33 = vrot.slane %v157_v24, 2  ;;  %vm175_vm5 = vcmask 1046534   ;;  %s1308_s13 = smov 48   ;;  %s1309_s1 = smov 8  }
  0x20   :  { %v164_v32 = vsel %vm163_vm1, %v162_v27, %v161_v30  ;;  %v177_v35 = vrot.slane %v158_v25, 1  ;;  %vm178_vm6 = vcmask 1047559   ;;  %vm193_vm7 = vcmask 261120   ;;  %s1310_s14 = smov 16   ;;  %s1311_s5 = smov 24  }
  0x21   :  { %v167_v34 = vsel %vm166_vm2, %v165_v28, %v164_v32  ;;  %vm214_vm8 = vcmask 64512   ;;  %vm251_vm9 = vcmask 1043456   ;;  %vm329_vm10 = vcmask 130112   ;;  %s1002_s0 = sshll.u32 %s1674_s7, 4  ;;  %s1003_s0 = int_to_ptr.hbm [resolvable:$true] %s1002_s0 }
  0x22   :  { %v170_v36 = vsel %vm169_vm3, %v168_v29, %v167_v34  ;;  %vm391_vm11 = vcmask 195712   ;;  %vm453_vm12 = vcmask 261312   ;;  %vm585_vm13 = vcmask 253952  }
  0x23   :  { %v173_v37 = vsel %vm172_vm4, %v171_v31, %v170_v36 }
  0x24   :  { %v176_v38 = vsel %vm175_vm5, %v174_v33, %v173_v37 }
  0x25   :  { %v179_v39 = vsel %vm178_vm6, %v177_v35, %v176_v38 }
  0x26   :  { %v180_v40 = vpack.c.b16 %v179_v39, %v179_v39 }
  0x28   :  { %1025 = vmatmul.msk.bf16.vlgmr.msra.gmra.mxu0 %vm193_vm7, %v180_v40 }
  0xa5   :  { %v206_v42 = vpop.f32.mrf.mxu0 }
  0xa6   :  { %v207_v43 = vadd.f32 %v1432_v41, %v206_v42 }
  0xa8   :  { %v1435_v44 = vpack.c.bf16 %v207_v43, %v207_v43 }
  0xaa   :  { %393 = vrot.lane.b32.xlu2 %v1435_v44, %s1299_s27  ;;  %269 = vrot.lane.b32.xlu1 %v1435_v44, %s1300_s28 }
  0xab   :  { %212 = vrot.lane.b32.xlu0 %v1435_v44, %s1301_s29 }
  0xad   :  { %v208_v45 = vpop.f32.mrf.mxu0 }
  0xb2   :  { %333 = vrot.lane.b32.xlu2 %v1435_v44, %s1302_s2  ;;  %395 = vrot.lane.b32.xlu1 %v1435_v44, %s1303_s30 }
  0xb3   :  { %271 = vrot.lane.b32.xlu0 %v1435_v44, %s1304_s8 }
  0xbb   :  { %331 = vrot.lane.b32.xlu0 %v1435_v44, %s1305_s10 }
 0x104   :  { %v394_v46 = vpop.permute.xlu2 %393 }
 0x10c   :  { %v334_v47 = vpop.permute.xlu2 %333 }
 0x10d   :  { %v339_v48 = vsel %vm214_vm8, %v334_v47, 0 }
 0x10e   :  { %348 = vmatpush.bf16.xpose.msrb.mxu0 %v339_v48 }
 0x11c   :  { %v270_v49 = vpop.permute.xlu1 %269 }
 0x11d   :  { %v213_v50 = vpop.permute.xlu0 %212 }
 0x11e   :  { %v219_v51 = vsel %vm214_vm8, %v213_v50, 0  ;;  %v1485_v50 = vld [vmem:[#allocation3 + $0x5] sm:$0x1] }
 0x11f   :  { %228 = vmatpush.bf16.xpose.msra.mxu1 %v219_v51 }
 0x124   :  { %v396_v52 = vpop.permute.xlu1 %395 }
 0x125   :  { %v272_v53 = vpop.permute.xlu0 %271  ;;  %v401_v54 = vsel %vm214_vm8, %v396_v52, 0 }
 0x126   :  { %1026 = vmatmul.msk.bf16.vlgmr.msra.gmra.mxu1 %vm214_vm8, %v1435_v44  ;;  %v277_v55 = vsel %vm214_vm8, %v272_v53, 0  ;;  %v1489_v53 = vld [vmem:[#allocation3 + $0x1] sm:$0x1] }
 0x127   :  { %286 = vmatpush.bf16.xpose.msra.mxu3 %v277_v55 }
 0x12d   :  { %v332_v56 = vpop.permute.xlu0 %331 }
 0x12e   :  { %1028 = vmatmul.msk.bf16.vlgmr.msra.gmra.mxu3 %vm214_vm8, %v270_v49  ;;  %1030 = vmatmul.msk.bf16.vlgmr.msrb.gmra.mxu0 %vm214_vm8, %v332_v56  ;;  %v1483_v49 = vld [vmem:[#allocation3 + $0x3] sm:$0x1]  ;;  %v1491_v56 = vld [vmem:[#allocation3 + $0x7] sm:$0x1] }
 0x12f   :  { %410 = vmatpush.bf16.xpose.msrb.mxu3 %v401_v54  ;;  %v603_v51 = vpack.c.bf16 %v1483_v49, %v1483_v49 }
 0x13e   :  { %1032 = vmatmul.msk.bf16.vlgmr.msrb.gmra.mxu3 %vm214_vm8, %v394_v46 }
 0x1a3   :  { %v230_v57 = vpop.f32.mrf.mxu1 }
 0x1a4   :  { %v234_v58 = vsel %vm214_vm8, %v230_v57, -inf }
 0x1a5   :  { %235 = vmax.xlane.f32.xlu1 %v234_v58  ;;  %v602_v58 = vpack.c.bf16 %v1489_v53, %v1489_v53 }
 0x1ab   :  { %v232_v59 = vpop.f32.mrf.mxu1  ;;  %v350_v60 = vpop.f32.mrf.mxu0 }
 0x1ac   :  { %v354_v10 = vsel %vm214_vm8, %v350_v60, -inf  ;;  %v619_v59 = vunpack.c.l.b16 %v603_v51 }
 0x1b1   :  { %v288_v61 = vpop.f32.mrf.mxu3 }
 0x1b2   :  { %v292_v62 = vsel %vm214_vm8, %v288_v61, -inf }
 0x1b3   :  { %293 = vmax.xlane.f32.xlu2 %v292_v62  ;;  %v352_v63 = vpop.f32.mrf.mxu0 }
 0x1b4   :  { %v618_v63 = vunpack.c.l.b16 %v602_v58 }
 0x1b9   :  { %v290_v6 = vpop.f32.mrf.mxu3 }
 0x1ba   :  { %v626_v6 = vrot.slane %v619_v59, 7 }
 0x1bb   :  { %355 = vmax.xlane.f32.xlu2 %v354_v10  ;;  %v1503_v10 = vld [vmem:[#allocation3 + $0xb] sm:$0x1] }
 0x1c1   :  { %v412_v11 = vpop.f32.mrf.mxu3 }
 0x1c2   :  { %v416_v12 = vsel %vm214_vm8, %v412_v11, -inf }
 0x1c3   :  { %417 = vmax.xlane.f32.xlu0 %v416_v12 }
 0x1c9   :  { %v414_v14 = vpop.f32.mrf.mxu3 }
 0x1d3   :  { %246 = vrot.lane.b32.xlu2 %v1435_v44, %s1291_s9 }
 0x1db   :  { %428 = vrot.lane.b32.xlu2 %v1435_v44, %s1306_s11 }
 0x218   :  { %v236_v15 = vpop.xlane.xlu1 %235 }
 0x219   :  { %v237_v16 = vsub.f32 %v230_v57, %v236_v15  ;;  %v604_v57 = vpack.c.bf16 %v1485_v50, %v1485_v50 }
 0x21b   :  { %v238_v17 = vmul.f32 1.442695, %v237_v16  ;;  %v620_v62 = vunpack.c.l.b16 %v604_v57  ;;  %v607_v16 = vpack.c.bf16 %v1503_v10, %v1503_v10 }
 0x21d   :  { %1106 = vpow2.f32 %v238_v17  ;;  %v628_v14 = vrot.slane %v620_v62, 6  ;;  %v627_v17 = vsel %vm160_vm0, %v626_v6, %v618_v63 }
 0x223   :  { %v1107_v18 = vpop.eup %1106 }
 0x224   :  { %v240_v19 = vsel %vm214_vm8, %v1107_v18, 0.0 }
 0x225   :  { %241 = vadd.xlane.f32.xlu1 %v240_v19 }
 0x226   :  { %v294_v20 = vpop.xlane.xlu2 %293 }
 0x227   :  { %v295_v23 = vsub.f32 %v288_v61, %v294_v20  ;;  %v605_v61 = vpack.c.bf16 %v1491_v56, %v1491_v56 }
 0x229   :  { %v296_v25 = vmul.f32 1.442695, %v295_v23  ;;  %v621_v12 = vunpack.c.l.b16 %v605_v61  ;;  %v1075_v61 = vld [vmem:[#allocation8] sm:$0xff] }
 0x22b   :  { %v630_v19 = vrot.slane %v621_v12, 5 }
 0x22e   :  { %v356_v21 = vpop.xlane.xlu2 %355 }
 0x22f   :  { %v357_v22 = vsub.f32 %v350_v60, %v356_v21  ;;  %v1499_v60 = vld [vmem:[#allocation3 + $0x9] sm:$0x1]  ;;  %v1513_v21 = vld [vmem:[#allocation3 + $0xf] sm:$0x1] }
 0x231   :  { %v358_v24 = vmul.f32 1.442695, %v357_v22 }
 0x233   :  { %1108 = vpow2.f32 %v358_v24  ;;  %v623_v24 = vunpack.c.l.b16 %v607_v16  ;;  %v1558_v16 = vld [vmem:[#allocation9 + $0x8] sm:$0xff] }
 0x234   :  { %1110 = vpow2.f32 %v296_v25 }
 0x236   :  { %v247_v26 = vpop.permute.xlu2 %246  ;;  %v418_v27 = vpop.xlane.xlu0 %417 }
 0x237   :  { %v253_v28 = vsel %vm251_vm9, %v247_v26, 0  ;;  %v419_v30 = vsub.f32 %v412_v11, %v418_v27  ;;  %v606_v11 = vpack.c.bf16 %v1499_v60, %v1499_v60  ;;  %v609_v26 = vpack.c.bf16 %v1513_v21, %v1513_v21 }
 0x238   :  { %262 = vmatpush.bf16.msra.mxu2 %v253_v28 }
 0x239   :  { %v1470_v29 = vpop.eup %1108  ;;  %v420_v32 = vmul.f32 1.442695, %v419_v30 }
 0x23a   :  { %v360_v31 = vsel %vm214_vm8, %v1470_v29, 0.0  ;;  %v1111_v33 = vpop.eup %1110 }
 0x23b   :  { %361 = vadd.xlane.f32.xlu0 %v360_v31  ;;  %1112 = vpow2.f32 %v420_v32  ;;  %v298_v34 = vsel %vm214_vm8, %v1111_v33, 0.0 }
 0x23e   :  { %304 = vrot.lane.b32.xlu1 %v1435_v44, %s1307_s12  ;;  %v429_v43 = vpop.permute.xlu2 %428 }
 0x23f   :  { %v434_v47 = vsel %vm251_vm9, %v429_v43, 0 }
 0x241   :  { %v1113_v35 = vpop.eup %1112 }
 0x242   :  { %v422_v36 = vsel %vm214_vm8, %v1113_v35, 0.0 }
 0x243   :  { %299 = vadd.xlane.f32.xlu0 %v298_v34 }
 0x24b   :  { %423 = vadd.xlane.f32.xlu0 %v422_v36  ;;  %v625_v36 = vunpack.c.l.b16 %v609_v26 }
 0x25f   :  { %366 = vrot.lane.b32.xlu0 %v1435_v44, %s1308_s13 }
 0x298   :  { %v242_v37 = vpop.xlane.xlu1 %241 }
 0x299   :  { %1114 = vrcp.f32 %v242_v37 }
 0x29f   :  { %v1115_v38 = vpop.eup %1114 }
 0x2a0   :  { %v244_v39 = vmul.f32 %v1115_v38, %v1107_v18  ;;  %v622_v18 = vunpack.c.l.b16 %v606_v11 }
 0x2a2   :  { %v245_v40 = vpack.c.bf16 %v244_v39, %v244_v39  ;;  %v632_v25 = vrot.slane %v622_v18, 4  ;;  %v496_v18 = vrot.slane %v1389_v3, 7 }
 0x2a4   :  { %1027 = vmatmul.msk.bf16.vlgmr.msra.gmra.mxu2 %vm214_vm8, %v245_v40  ;;  %v638_v40 = vrot.slane %v625_v36, 1 }
 0x2ae   :  { %v362_v42 = vpop.xlane.xlu0 %361 }
 0x2b0   :  { %v305_v45 = vpop.permute.xlu1 %304 }
 0x2b1   :  { %v310_v46 = vsel %vm251_vm9, %v305_v45, 0 }
 0x2b2   :  { %319 = vmatpush.bf16.msrb.mxu2 %v310_v46 }
 0x2b6   :  { %443 = vmatpush.bf16.msra.mxu2 %v434_v47  ;;  %v300_v48 = vpop.xlane.xlu0 %299 }
 0x2b7   :  { %1116 = vrcp.f32 %v300_v48 }
 0x2bd   :  { %v1117_v44 = vpop.eup %1116 }
 0x2be   :  { %v302_v52 = vmul.f32 %v1117_v44, %v1111_v33  ;;  %v424_v54 = vpop.xlane.xlu0 %423  ;;  %v634_v33 = vrot.slane %v623_v24, 3 }
 0x2bf   :  { %1118 = vrcp.f32 %v424_v54 }
 0x2c0   :  { %v303_v55 = vpack.c.bf16 %v302_v52, %v302_v52  ;;  %1120 = vrcp.f32 %v362_v42 }
 0x2c2   :  { %1029 = vmatmul.msk.bf16.vlgmr.msrb.gmra.mxu2 %vm214_vm8, %v303_v55 }
 0x2c3   :  { %650 = vmatpush.bf16.msrb.mxu2 %v1383_v0  ;;  %v1508_v0 = vld [vmem:[#allocation3 + $0xd] sm:$0x1] }
 0x2c4   :  { %v608_v22 = vpack.c.bf16 %v1508_v0, %v1508_v0 }
 0x2c5   :  { %v1119_v15 = vpop.eup %1118 }
 0x2c6   :  { %v426_v20 = vmul.f32 %v1119_v15, %v1113_v35  ;;  %v1121_v23 = vpop.eup %1120  ;;  %v624_v31 = vunpack.c.l.b16 %v608_v22  ;;  %v500_v22 = vrot.slane %v1393_v5, 5 }
 0x2c7   :  { %651 = vmatpush.bf16.msrb.mxu2 %v1385_v1  ;;  %v629_v1 = vsel %vm163_vm1, %v628_v14, %v627_v17  ;;  %v364_v28 = vmul.f32 %v1121_v23, %v1470_v29  ;;  %v1561_v17 = vld [vmem:[#allocation9] sm:$0xff]  ;;  %v502_v23 = vrot.slane %v1398_v7, 4 }
 0x2c8   :  { %v631_v27 = vsel %vm166_vm2, %v630_v19, %v629_v1  ;;  %v427_v30 = vpack.c.bf16 %v426_v20, %v426_v20  ;;  %v636_v38 = vrot.slane %v624_v31, 2  ;;  %v498_v19 = vrot.slane %v1391_v4, 6 }
 0x2c9   :  { %v633_v35 = vsel %vm169_vm3, %v632_v25, %v631_v27  ;;  %v365_v37 = vpack.c.bf16 %v364_v28, %v364_v28  ;;  %v497_v20 = vsel %vm160_vm0, %v496_v18, %v1387_v2  ;;  %v504_v25 = vrot.slane %v1400_v8, 3  ;;  %v1580_v2 = vld [vmem:[%s1671_s4] ss:$0 sm:$0xff]  ;;  %s1312_s4 = smov [#allocation12]  }
 0x2ca   :  { %v635_v39 = vsel %vm172_vm4, %v634_v33, %v633_v35  ;;  %v499_v1 = vsel %vm163_vm1, %v498_v19, %v497_v20  ;;  %v506_v27 = vrot.slane %v1402_v9, 2  ;;  %v508_v4 = vrot.slane %v1410_v13, 1  ;;  %v1080_v33 = vld [vmem:[#allocation11 + $0x8] sm:$0xff]  ;;  %v1079_v35 = vld [vmem:[#allocation11] sm:$0xff] }
 0x2cb   :  { %v637_v29 = vsel %vm175_vm5, %v636_v38, %v635_v39  ;;  %v501_v24 = vsel %vm166_vm2, %v500_v22, %v499_v1  ;;  %563 = vmatpush.bf16.msra.mxu3 %v1080_v33 }
 0x2cc   :  { %v639_v42 = vsel %vm178_vm6, %v638_v40, %v637_v29  ;;  %v503_v26 = vsel %vm169_vm3, %v502_v23, %v501_v24 }
 0x2cd   :  { %v640_v43 = vpack.c.b16 %v639_v42, %v639_v42  ;;  %v505_v3 = vsel %vm172_vm4, %v504_v25, %v503_v26 }
 0x2ce   :  { %v507_v5 = vsel %vm175_vm5, %v506_v27, %v505_v3 }
 0x2cf   :  { %v509_v28 = vsel %vm178_vm6, %v508_v4, %v507_v5  ;;  %564 = vmatpush.bf16.msra.mxu3 %v1079_v35 }
 0x2d1   :  { %v367_v32 = vpop.permute.xlu0 %366 }
 0x2d2   :  { %1033 = vmatmul.msk.bf16.vlgmr.msra.gmra.mxu2 %vm214_vm8, %v427_v30  ;;  %v372_v34 = vsel %vm251_vm9, %v367_v32, 0 }
 0x2d3   :  { %381 = vmatpush.bf16.msrb.mxu1 %v372_v34 }
 0x2d6   :  { %1031 = vmatmul.msk.bf16.vlgmr.msrb.gmra.mxu1 %vm214_vm8, %v365_v37 }
 0x2d7   :  { %534 = vmatpush.bf16.msra.mxu1 %v1558_v16 }
 0x2db   :  { %535 = vmatpush.bf16.msra.mxu1 %v1561_v17 }
 0x2e2   :  { %1061 = vmatmul.msk.bf16.vlgmr.msrb.gmra.mxu2 %vm193_vm7, %v640_v43 }
 0x327   :  { %v264_v45 = vpop.f32.mrf.mxu2 }
 0x328   :  { %268 = vst.msk [vmem:[#allocation2] sm:$0xff] %vm214_vm8, %v264_v45 }
 0x32f   :  { %v266_v46 = vpop.f32.mrf.mxu2 }
 0x345   :  { %v321_v47 = vpop.f32.mrf.mxu2 }
 0x346   :  { %326 = vrot.lane.b32.xlu1 %v321_v47, %s1309_s1 }
 0x34d   :  { %v323_v48 = vpop.f32.mrf.mxu2 }
 0x353   :  { %v383_v44 = vpop.f32.mrf.mxu1 }
 0x354   :  { %388 = vrot.lane.b32.xlu2 %v383_v44, %s1310_s14 }
 0x355   :  { %v445_v51 = vpop.f32.mrf.mxu2 }
 0x356   :  { %450 = vrot.lane.b32.xlu1 %v445_v51, %s1311_s5 }
 0x35b   :  { %v385_v52 = vpop.f32.mrf.mxu1 }
 0x35d   :  { %v447_v54 = vpop.f32.mrf.mxu2 }
 0x365   :  { %v653_v55 = vpop.f32.mrf.mxu2 }
 0x366   :  { %v654_v57 = vadd.f32 %v1432_v41, %v653_v55  ;;  %v1076_v41 = vld [vmem:[#allocation8 + $0x8] sm:$0xff] }
 0x367   :  { %481 = vmatpush.bf16.msra.mxu0 %v1076_v41 }
 0x368   :  { %v1535_v58 = vpack.c.bf16 %v654_v57, %v654_v57 }
 0x36a   :  { %659 = vrot.lane.b32.xlu0 %v1535_v58, %s1301_s29  ;;  %716 = vrot.lane.b32.xlu2 %v1535_v58, %s1304_s8 }
 0x36b   :  { %714 = vrot.lane.b32.xlu1 %v1535_v58, %s1300_s28  ;;  %482 = vmatpush.bf16.msra.mxu0 %v1075_v61 }
 0x36d   :  { %v655_v59 = vpop.f32.mrf.mxu2 }
 0x372   :  { %777 = vrot.lane.b32.xlu0 %v1535_v58, %s1302_s2  ;;  %838 = vrot.lane.b32.xlu2 %v1535_v58, %s1303_s30 }
 0x373   :  { %836 = vrot.lane.b32.xlu1 %v1535_v58, %s1299_s27 }
 0x37a   :  { %775 = vrot.lane.b32.xlu2 %v1535_v58, %s1305_s10 }
 0x3ae   :  { %v389_v63 = vpop.permute.xlu2 %388 }
 0x3b8   :  { %v327_v62 = vpop.permute.xlu1 %326 }
 0x3b9   :  { %330 = vst.msk [vmem:[#allocation2] sm:$0xff] %vm329_vm10, %v327_v62 }
 0x3ba   :  { %392 = vst.msk [vmem:[#allocation2] sm:$0xff] %vm391_vm11, %v389_v63 }
 0x3c4   :  { %v717_v32 = vpop.permute.xlu2 %716 }
 0x3c5   :  { %v722_v36 = vsel %vm214_vm8, %v717_v32, 0 }
 0x3c6   :  { %731 = vmatpush.bf16.xpose.msrb.mxu3 %v722_v36 }
 0x3c8   :  { %v451_v6 = vpop.permute.xlu1 %450 }
 0x3c9   :  { %454 = vst.msk [vmem:[#allocation2] sm:$0xff] %vm453_vm12, %v451_v6 }
 0x3cc   :  { %v839_v37 = vpop.permute.xlu2 %838 }
 0x3cd   :  { %v844_v45 = vsel %vm214_vm8, %v839_v37, 0 }
 0x3d0   :  { %v455_v11 = vld [vmem:[#allocation2] sm:$0xff] }
 0x3d1   :  { %v456_v12 = vpack.c.bf16 %v455_v11, %v455_v11 }
 0x3d3   :  { %1042 = vmatmul.msk.bf16.vlgmr.msra.gmra.mxu0 %vm193_vm7, %v456_v12 }
 0x3d4   :  { %v776_v40 = vpop.permute.xlu2 %775 }
 0x3dc   :  { %v660_v14 = vpop.permute.xlu0 %659 }
 0x3dd   :  { %v665_v15 = vsel %vm214_vm8, %v660_v14, 0  ;;  %v715_v48 = vpop.permute.xlu1 %714 }
 0x3de   :  { %674 = vmatpush.bf16.xpose.msrb.mxu0 %v665_v15 }
 0x3e4   :  { %v778_v13 = vpop.permute.xlu0 %777 }
 0x3e5   :  { %1062 = vmatmul.msk.bf16.vlgmr.msrb.gmra.mxu0 %vm214_vm8, %v1535_v58  ;;  %v783_v34 = vsel %vm214_vm8, %v778_v13, 0  ;;  %v837_v55 = vpop.permute.xlu1 %836 }
 0x3e6   :  { %792 = vmatpush.bf16.xpose.msra.mxu0 %v783_v34 }
 0x3ee   :  { %908 = vmatpush.bf16.msrb.mxu0 %v1076_v41 }
 0x3f2   :  { %909 = vmatpush.bf16.msrb.mxu0 %v1075_v61 }
 0x3f5   :  { %1066 = vmatmul.msk.bf16.vlgmr.msra.gmra.mxu0 %vm214_vm8, %v776_v40 }
 0x450   :  { %v484_v7 = vpop.f32.mrf.mxu0 }
 0x451   :  { %v485_v8 = vadd.f32 %v1580_v2, %v484_v7 }
 0x453   :  { %v511_v30 = vadd.f32 %v509_v28, %v485_v8 }
 0x455   :  { %v512_v31 = vpack.c.bf16 %v511_v30, %v511_v30 }
 0x457   :  { %1051 = vmatmul.msk.bf16.vlgmr.msra.gmra.mxu1 %vm193_vm7, %v512_v31 }
 0x458   :  { %v486_v9 = vpop.f32.mrf.mxu0 }
 0x462   :  { %v676_v38 = vpop.f32.mrf.mxu0 }
 0x463   :  { %v680_v39 = vsel %vm214_vm8, %v676_v38, -inf }
 0x464   :  { %681 = vmax.xlane.f32.xlu0 %v680_v39 }
 0x46a   :  { %v678_v29 = vpop.f32.mrf.mxu0 }
 0x472   :  { %v794_v44 = vpop.f32.mrf.mxu0 }
 0x473   :  { %v798_v22 = vsel %vm214_vm8, %v794_v44, -inf }
 0x478   :  { %692 = vrot.lane.b32.xlu0 %v1535_v58, %s1291_s9  ;;  %s1000_s9 = sshll.u32 %s1312_s4, 4  ;;  %s1001_s9 = int_to_ptr.vmem [resolvable:$true] %s1000_s9 }
 0x47a   :  { %v796_v54 = vpop.f32.mrf.mxu0 }
 0x4d4   :  { %v537_v42 = vpop.f32.mrf.mxu1 }
 0x4d5   :  { %v541_v43 = vpack.c.bf16 %v537_v42, %v537_v42 }
 0x4d7   :  { %1060 = vmatmul.msk.bf16.vlgmr.msra.gmra.mxu3 %vm193_vm7, %v541_v43  ;;  %v682_v47 = vpop.xlane.xlu0 %681 }
 0x4d8   :  { %853 = vmatpush.bf16.xpose.msra.mxu3 %v844_v45  ;;  %v683_v19 = vsub.f32 %v676_v38, %v682_v47 }
 0x4da   :  { %v684_v1 = vmul.f32 1.442695, %v683_v19 }
 0x4dc   :  { %v539_v46 = vpop.f32.mrf.mxu1  ;;  %1122 = vpow2.f32 %v684_v1 }
 0x4e2   :  { %v1123_v25 = vpop.eup %1122 }
 0x4e3   :  { %v686_v27 = vsel %vm214_vm8, %v1123_v25, 0.0 }
 0x4e7   :  { %1064 = vmatmul.msk.bf16.vlgmr.msrb.gmra.mxu3 %vm214_vm8, %v715_v48 }
 0x4e8   :  { %966 = vmatpush.bf16.msrb.mxu3 %v1080_v33 }
 0x4ea   :  { %v693_v51 = vpop.permute.xlu0 %692 }
 0x4eb   :  { %v698_v52 = vsel %vm251_vm9, %v693_v51, 0 }
 0x4ec   :  { %707 = vmatpush.bf16.msrb.mxu1 %v698_v52  ;;  %967 = vmatpush.bf16.msrb.mxu3 %v1079_v35 }
 0x4f7   :  { %1068 = vmatmul.msk.bf16.vlgmr.msra.gmra.mxu3 %vm214_vm8, %v837_v55 }
 0x55a   :  { %v566_v57 = vpop.f32.mrf.mxu3 }
 0x55b   :  { %v567_v59 = vadd.f32 %v566_v57, %v511_v30 }
 0x55d   :  { %v571_v41 = vrot.slane %v567_v59, 1  ;;  %v572_v61 = vrot.slane %v567_v59, 2  ;;  %v573_v62 = vrot.slane %v567_v59, 3  ;;  %586 = vst.msk [vmem:[#allocation12] sm:$0x1] %vm585_vm13, %v567_v59  ;;  %v574_v63 = vrot.slane %v567_v59, 4 }
 0x55e   :  { %v575_v6 = vrot.slane %v567_v59, 5  ;;  %v576_v11 = vrot.slane %v567_v59, 6  ;;  %v577_v12 = vrot.slane %v567_v59, 7 }
 0x55f   :  { %587 = vst.msk [vmem:[#allocation12 + $0x2] sm:$0x1] %vm585_vm13, %v571_v41 }
 0x560   :  { %588 = vst.msk [vmem:[#allocation12 + $0x4] sm:$0x1] %vm585_vm13, %v572_v61 }
 0x561   :  { %589 = vst.msk [vmem:[#allocation12 + $0x6] sm:$0x1] %vm585_vm13, %v573_v62 }
 0x562   :  { %590 = vst.msk [vmem:[#allocation12 + $0x8] sm:$0x1] %vm585_vm13, %v574_v63  ;;  %v568_v14 = vpop.f32.mrf.mxu3 }
 0x563   :  { %591 = vst.msk [vmem:[#allocation12 + $0xa] sm:$0x1] %vm585_vm13, %v575_v6 }
 0x564   :  { %592 = vst.msk [vmem:[#allocation12 + $0xc] sm:$0x1] %vm585_vm13, %v576_v11 }
 0x565   :  { %593 = vst.msk [vmem:[#allocation12 + $0xe] sm:$0x1] %vm585_vm13, %v577_v12 }
 0x56a   :  { %v733_v15 = vpop.f32.mrf.mxu3 }
 0x56b   :  { %v737_v18 = vsel %vm214_vm8, %v733_v15, -inf }
 0x56c   :  { %738 = vmax.xlane.f32.xlu1 %v737_v18 }
 0x572   :  { %v735_v20 = vpop.f32.mrf.mxu3 }
 0x574   :  { %799 = vmax.xlane.f32.xlu1 %v798_v22 }
 0x57a   :  { %v855_v23 = vpop.f32.mrf.mxu3 }
 0x57b   :  { %v859_v24 = vsel %vm214_vm8, %v855_v23, -inf }
 0x57c   :  { %860 = vmax.xlane.f32.xlu2 %v859_v24  ;;  %v925_v24 = vrot.slane %v1485_v50, 6  ;;  %v935_v50 = vrot.slane %v1513_v21, 1 }
 0x582   :  { %v857_v26 = vpop.f32.mrf.mxu3 }
 0x583   :  { %v927_v26 = vrot.slane %v1491_v56, 5 }
 0x584   :  { %687 = vadd.xlane.f32.xlu2 %v686_v27 }
 0x58d   :  { %749 = vrot.lane.b32.xlu1 %v1535_v58, %s1307_s12 }
 0x5df   :  { %v739_v3 = vpop.xlane.xlu1 %738 }
 0x5e0   :  { %v740_v4 = vsub.f32 %v733_v15, %v739_v3  ;;  %v929_v3 = vrot.slane %v1499_v60, 4 }
 0x5e2   :  { %v741_v5 = vmul.f32 1.442695, %v740_v4 }
 0x5e4   :  { %1124 = vpow2.f32 %v741_v5  ;;  %v931_v5 = vrot.slane %v1503_v10, 3 }
 0x5e7   :  { %v800_v7 = vpop.xlane.xlu1 %799 }
 0x5e8   :  { %v801_v28 = vsub.f32 %v794_v44, %v800_v7 }
 0x5ea   :  { %v1125_v8 = vpop.eup %1124  ;;  %v802_v30 = vmul.f32 1.442695, %v801_v28  ;;  %v933_v28 = vrot.slane %v1508_v0, 2 }
 0x5eb   :  { %v743_v31 = vsel %vm214_vm8, %v1125_v8, 0.0 }
 0x5ec   :  { %1126 = vpow2.f32 %v802_v30  ;;  %744 = vadd.xlane.f32.xlu0 %v743_v31 }
 0x5ef   :  { %v861_v9 = vpop.xlane.xlu2 %860 }
 0x5f0   :  { %v862_v32 = vsub.f32 %v855_v23, %v861_v9  ;;  %v923_v23 = vrot.slane %v1483_v49, 7 }
 0x5f2   :  { %v1127_v33 = vpop.eup %1126  ;;  %v863_v13 = vmul.f32 1.442695, %v862_v32 }
 0x5f3   :  { %v804_v34 = vsel %vm214_vm8, %v1127_v33, 0.0 }
 0x5f4   :  { %1128 = vpow2.f32 %v863_v13  ;;  %805 = vadd.xlane.f32.xlu2 %v804_v34 }
 0x5f7   :  { %v688_v35 = vpop.xlane.xlu2 %687 }
 0x5f8   :  { %1130 = vrcp.f32 %v688_v35 }
 0x5fa   :  { %v1129_v36 = vpop.eup %1128 }
 0x5fb   :  { %v865_v37 = vsel %vm214_vm8, %v1129_v36, 0.0 }
 0x5fc   :  { %866 = vadd.xlane.f32.xlu2 %v865_v37 }
 0x5fe   :  { %v1131_v38 = vpop.eup %1130 }
 0x5ff   :  { %v690_v39 = vmul.f32 %v1131_v38, %v1123_v25  ;;  %v750_v40 = vpop.permute.xlu1 %749  ;;  %v924_v25 = vsel %vm160_vm0, %v923_v23, %v1489_v53 }
 0x600   :  { %v755_v29 = vsel %vm251_vm9, %v750_v40, 0  ;;  %810 = vrot.lane.b32.xlu0 %v1535_v58, %s1308_s13  ;;  %v926_v27 = vsel %vm163_vm1, %v925_v24, %v924_v25 }
 0x601   :  { %v691_v42 = vpack.c.bf16 %v690_v39, %v690_v39  ;;  %764 = vmatpush.bf16.msra.mxu2 %v755_v29  ;;  %v928_v4 = vsel %vm166_vm2, %v927_v26, %v926_v27 }
 0x602   :  { %v930_v7 = vsel %vm169_vm3, %v929_v3, %v928_v4 }
 0x603   :  { %1063 = vmatmul.msk.bf16.vlgmr.msrb.gmra.mxu1 %vm214_vm8, %v691_v42  ;;  %v932_v49 = vsel %vm172_vm4, %v931_v5, %v930_v7 }
 0x604   :  { %v934_v53 = vsel %vm175_vm5, %v933_v28, %v932_v49 }
 0x605   :  { %v936_v56 = vsel %vm178_vm6, %v935_v50, %v934_v53 }
 0x614   :  { %871 = vrot.lane.b32.xlu2 %v1535_v58, %s1306_s11 }
 0x65f   :  { %v745_v43 = vpop.xlane.xlu0 %744 }
 0x660   :  { %1132 = vrcp.f32 %v745_v43 }
 0x666   :  { %v1133_v45 = vpop.eup %1132 }
 0x667   :  { %v747_v46 = vmul.f32 %v1133_v45, %v1125_v8  ;;  %v806_v47 = vpop.xlane.xlu2 %805 }
 0x668   :  { %1134 = vrcp.f32 %v806_v47 }
 0x669   :  { %v748_v48 = vpack.c.bf16 %v747_v46, %v747_v46 }
 0x66b   :  { %1065 = vmatmul.msk.bf16.vlgmr.msra.gmra.mxu2 %vm214_vm8, %v748_v48 }
 0x66e   :  { %v1135_v44 = vpop.eup %1134 }
 0x66f   :  { %v867_v51 = vpop.xlane.xlu2 %866  ;;  %v808_v52 = vmul.f32 %v1135_v44, %v1127_v33 }
 0x670   :  { %1136 = vrcp.f32 %v867_v51 }
 0x671   :  { %v809_v57 = vpack.c.bf16 %v808_v52, %v808_v52 }
 0x672   :  { %v811_v54 = vpop.permute.xlu0 %810 }
 0x673   :  { %v816_v55 = vsel %vm251_vm9, %v811_v54, 0 }
 0x674   :  { %825 = vmatpush.bf16.msra.mxu1 %v816_v55 }
 0x676   :  { %v1137_v58 = vpop.eup %1136 }
 0x677   :  { %v869_v59 = vmul.f32 %v1137_v58, %v1129_v36  ;;  %v872_v41 = vpop.permute.xlu2 %871  ;;  %1067 = vmatmul.msk.bf16.vlgmr.msra.gmra.mxu1 %vm214_vm8, %v809_v57 }
 0x678   :  { %949 = vmatpush.bf16.msrb.mxu1 %v1558_v16  ;;  %v877_v61 = vsel %vm251_vm9, %v872_v41, 0 }
 0x679   :  { %v870_v62 = vpack.c.bf16 %v869_v59, %v869_v59  ;;  %886 = vmatpush.bf16.msrb.mxu2 %v877_v61 }
 0x67c   :  { %950 = vmatpush.bf16.msrb.mxu1 %v1561_v17  ;;  %1069 = vmatmul.msk.bf16.vlgmr.msrb.gmra.mxu2 %vm214_vm8, %v870_v62 }
 0x680   :  { %v709_v63 = vpop.f32.mrf.mxu1 }
 0x681   :  { %713 = vst.msk [vmem:[#allocation2] sm:$0xff] %vm214_vm8, %v709_v63 }
 0x688   :  { %v711_v6 = vpop.f32.mrf.mxu1 }
 0x6ee   :  { %v766_v11 = vpop.f32.mrf.mxu2 }
 0x6ef   :  { %771 = vrot.lane.b32.xlu1 %v766_v11, %s1309_s1 }
 0x6f4   :  { %v827_v16 = vpop.f32.mrf.mxu1 }
 0x6f5   :  { %832 = vrot.lane.b32.xlu0 %v827_v16, %s1310_s14 }
 0x6f6   :  { %v768_v12 = vpop.f32.mrf.mxu2 }
 0x6fc   :  { %v829_v14 = vpop.f32.mrf.mxu1 }
 0x6ff   :  { %v888_v15 = vpop.f32.mrf.mxu2 }
 0x700   :  { %893 = vrot.lane.b32.xlu1 %v888_v15, %s1311_s5 }
 0x707   :  { %v890_v18 = vpop.f32.mrf.mxu2 }
 0x761   :  { %v772_v19 = vpop.permute.xlu1 %771 }
 0x762   :  { %774 = vst.msk [vmem:[#allocation2] sm:$0xff] %vm329_vm10, %v772_v19 }
 0x767   :  { %v833_v17 = vpop.permute.xlu0 %832 }
 0x768   :  { %835 = vst.msk [vmem:[#allocation2] sm:$0xff] %vm391_vm11, %v833_v17 }
 0x772   :  { %v894_v20 = vpop.permute.xlu1 %893 }
 0x773   :  { %896 = vst.msk [vmem:[#allocation2] sm:$0xff] %vm453_vm12, %v894_v20 }
 0x77a   :  { %v897_v22 = vld [vmem:[#allocation2] sm:$0xff] }
 0x77b   :  { %v898_v1 = vpack.c.bf16 %v897_v22, %v897_v22 }
 0x77d   :  { %1070 = vmatmul.msk.bf16.vlgmr.msrb.gmra.mxu0 %vm193_vm7, %v898_v1 }
 0x7fa   :  { %v911_v8 = vpop.f32.mrf.mxu0 }
 0x7fb   :  { %v912_v30 = vadd.f32 %v1580_v2, %v911_v8 }
 0x7fd   :  { %v938_v60 = vadd.f32 %v936_v56, %v912_v30 }
 0x7ff   :  { %v939_v31 = vpack.c.bf16 %v938_v60, %v938_v60 }
 0x801   :  { %1071 = vmatmul.msk.bf16.vlgmr.msrb.gmra.mxu1 %vm193_vm7, %v939_v31 }
 0x802   :  { %v913_v10 = vpop.f32.mrf.mxu0 }
 0x87e   :  { %v952_v9 = vpop.f32.mrf.mxu1 }
 0x87f   :  { %v956_v32 = vpack.c.bf16 %v952_v9, %v952_v9 }
 0x881   :  { %1072 = vmatmul.msk.bf16.vlgmr.msrb.gmra.mxu3 %vm193_vm7, %v956_v32 }
 0x886   :  { %v954_v0 = vpop.f32.mrf.mxu1 }
 0x904   :  { %v969_v33 = vpop.f32.mrf.mxu3 }
 0x905   :  { %v970_v13 = vadd.f32 %v969_v33, %v938_v60 }
 0x907   :  { %v974_v21 = vrot.slane %v970_v13, 1  ;;  %v975_v34 = vrot.slane %v970_v13, 2  ;;  %v976_v35 = vrot.slane %v970_v13, 3  ;;  %988 = vst.msk [vmem:[#allocation12 + $0x1] sm:$0x1] %vm585_vm13, %v970_v13  ;;  %v977_v36 = vrot.slane %v970_v13, 4 }
 0x908   :  { %v978_v37 = vrot.slane %v970_v13, 5  ;;  %v979_v2 = vrot.slane %v970_v13, 6  ;;  %v980_v38 = vrot.slane %v970_v13, 7 }
 0x909   :  { %989 = vst.msk [vmem:[#allocation12 + $0x3] sm:$0x1] %vm585_vm13, %v974_v21 }
 0x90a   :  { %990 = vst.msk [vmem:[#allocation12 + $0x5] sm:$0x1] %vm585_vm13, %v975_v34 }
 0x90b   :  { %991 = vst.msk [vmem:[#allocation12 + $0x7] sm:$0x1] %vm585_vm13, %v976_v35 }
 0x90c   :  { %992 = vst.msk [vmem:[#allocation12 + $0x9] sm:$0x1] %vm585_vm13, %v977_v36  ;;  %v971_v39 = vpop.f32.mrf.mxu3 }
 0x90d   :  { %993 = vst.msk [vmem:[#allocation12 + $0xb] sm:$0x1] %vm585_vm13, %v978_v37 }
 0x90e   :  { %994 = vst.msk [vmem:[#allocation12 + $0xd] sm:$0x1] %vm585_vm13, %v979_v2 }
 0x90f   :  { %995 = vst.msk [vmem:[#allocation12 + $0xf] sm:$0x1] %vm585_vm13, %v980_v38 }
 0x910   :  { %1008 = dma.vmem_to_hbm [thread:$0]  %s1001_s9, 256, %s1003_s0, [#allocation5], %s1295_s19, %s1295_s19, %s1296_s20  }
 0x911   :  { %1288 = dma.done.wait [#allocation5], 256  }
 0x912   :  { %1289 = vsyncadd [#allocation5], 4294967040 }
 0x913   :  { %1013 = vsyncpa [#allocation4], 1 }
 0x914   :  { %1014 = vsyncpa [#allocation7], 1 }
 0x915   :  { %1015 = vsyncpa [#allocation10], 1 }
 0x916   :  { %1016 = vsyncpa [#allocation5], 1 }

</bundles_post_ra>
